<compile_context>
chip_gen: v5e
topology: v5e:2x2
jax: 0.10.0
libtpu: 0.0.40
codegen_flags: <defaults>
</compile_context>

<pallas_src>
import jax
import jax.numpy as jnp
from jax.experimental import pallas as pl
from jax.experimental.pallas import tpu as pltpu

NB_OUTS = 2
LANE = 128


def multout_linear_kernel(x_ref, w_ref, b_ref, *out_refs):
    """y = x @ w + b computed once, written to every output ref."""
    # bf16 operands, f32 accumulation on the MXU.
    acc = jnp.dot(x_ref[...], w_ref[...], preferred_element_type=jnp.float32)
    y = acc + b_ref[...]  # single bias broadcast/add (hoisted out of the loop)
    for o_ref in out_refs:
        o_ref[...] = y.astype(o_ref.dtype)  # extra stores ride the idle vst slot


def multout_model(x, w_t, b, nb_outs=NB_OUTS):
    """x (B, D_in) f32, w_t (D_in, D_out) f32, b (1, D_out) f32 -> list of (B, D_out) f32."""
    B, D = x.shape
    O = w_t.shape[1]
    O_pad = ((O + LANE - 1) // LANE) * LANE  # lane-dense output width

    # bf16 inputs for the MXU; keep bias in f32 for the f32 accumulator.
    x_bf = x.astype(jnp.bfloat16)
    w_bf = w_t.astype(jnp.bfloat16)
    b_f32 = b.astype(jnp.float32)
    if O_pad != O:
        w_bf = jnp.pad(w_bf, ((0, 0), (0, O_pad - O)))
        b_f32 = jnp.pad(b_f32, ((0, 0), (0, O_pad - O)))

    out_shape = tuple(
        jax.ShapeDtypeStruct((B, O_pad), jnp.float32) for _ in range(nb_outs)
    )

    cost = pl.CostEstimate(
        flops=2 * B * D * O_pad + B * O_pad,
        transcendentals=0,
        bytes_accessed=(
            x_bf.size * 2 + w_bf.size * 2 + b_f32.size * 4
            + nb_outs * B * O_pad * 4
        ),
    )

    # Shapes are tiny: full-array blocks, single grid step (minimum per-call
    # overhead).  If this ever scales, re-tile to 128-aligned (M,K,N) blocks
    # with a K-reduction axis and a parallel batch axis for v7x's 2 TCs.
    outs = pl.pallas_call(
        multout_linear_kernel,
        out_shape=out_shape,
        grid=(1,),
        in_specs=[
            pl.BlockSpec((B, D), lambda i: (0, 0)),
            pl.BlockSpec((D, O_pad), lambda i: (0, 0)),
            pl.BlockSpec((1, O_pad), lambda i: (0, 0)),
        ],
        out_specs=tuple(
            pl.BlockSpec((B, O_pad), lambda i: (0, 0)) for _ in range(nb_outs)
        ),
        compiler_params=pltpu.CompilerParams(
            dimension_semantics=("arbitrary",)
        ),
        cost_estimate=cost,
    )(x_bf, w_bf, b_f32)

    # Strip lane padding back to the true output width.
    return [o[:, :O] for o in outs]


if __name__ == "__main__":
    key = jax.random.PRNGKey(0)
    k_x, k_w, k_b = jax.random.split(key, 3)

    B, D_IN, D_OUT = 8, 32, 32

    x = jax.random.normal(k_x, (B, D_IN), dtype=jnp.float32)
    # PyTorch nn.Linear stores weight as (D_OUT, D_IN); transpose for the kernel.
    w_pt = jax.random.normal(k_w, (D_OUT, D_IN), dtype=jnp.float32) * (
        1.0 / jnp.sqrt(D_IN)
    )
    b_pt = jax.random.normal(k_b, (D_OUT,), dtype=jnp.float32) * 0.01

    w_t = jnp.asarray(w_pt.T)        # (D_IN, D_OUT)
    b = b_pt.reshape(1, D_OUT)       # (1, D_OUT)

    outs = multout_model(x, w_t, b, nb_outs=NB_OUTS)
    outs = [jax.block_until_ready(o) for o in outs]

    # Reference with the same bf16-operand / f32-accumulate compute.
    ref_bf16 = (
        jnp.dot(
            x.astype(jnp.bfloat16),
            w_t.astype(jnp.bfloat16),
            preferred_element_type=jnp.float32,
        )
        + b
    )
    # Full-f32 reference (looser check: bf16 operand rounding only).
    ref_f32 = x @ w_t + b

    assert len(outs) == NB_OUTS
    for o in outs:
        assert o.shape == (B, D_OUT)
        assert o.dtype == jnp.float32
        assert jnp.allclose(o, ref_bf16, atol=1e-4, rtol=1e-4)
        assert jnp.allclose(o, ref_f32, atol=5e-2, rtol=5e-2)

    print("KERNEL_OK")
</pallas_src>

<mosaic_0001>
module attributes {stable_mosaic.version = 11 : i64} {
  func.func @multout_linear_kernel(%arg0: i32, %arg1: memref<8x32xbf16, #tpu.memory_space<vmem>>, %arg2: memref<32x128xbf16, #tpu.memory_space<vmem>>, %arg3: memref<1x128xf32, #tpu.memory_space<vmem>>, %arg4: memref<8x128xf32, #tpu.memory_space<vmem>>, %arg5: memref<8x128xf32, #tpu.memory_space<vmem>>) attributes {dimension_semantics = [#tpu.dimension_semantics<arbitrary>], iteration_bounds = array<i64: 1>, scalar_prefetch = 0 : i64, scratch_operands = 0 : i64, tpu.core_type = #tpu.core_type<tc>, window_params = [{pipeline_mode = #tpu.pipeline_mode<synchronous>, transform_indices = @transform_0, window_bounds = array<i64: 8, 32>}, {pipeline_mode = #tpu.pipeline_mode<synchronous>, transform_indices = @transform_1, window_bounds = array<i64: 32, 128>}, {pipeline_mode = #tpu.pipeline_mode<synchronous>, transform_indices = @transform_2, window_bounds = array<i64: 1, 128>}, {pipeline_mode = #tpu.pipeline_mode<synchronous>, transform_indices = @transform_3, window_bounds = array<i64: 8, 128>}, {pipeline_mode = #tpu.pipeline_mode<synchronous>, transform_indices = @transform_4, window_bounds = array<i64: 8, 128>}]} {
    %c0 = arith.constant 0 : index
    %c0_0 = arith.constant 0 : index
    %0 = vector.load %arg1[%c0, %c0_0] : memref<8x32xbf16, #tpu.memory_space<vmem>>, vector<8x32xbf16>
    %c0_1 = arith.constant 0 : index
    %c0_2 = arith.constant 0 : index
    %1 = vector.load %arg2[%c0_1, %c0_2] : memref<32x128xbf16, #tpu.memory_space<vmem>>, vector<32x128xbf16>
    %cst = arith.constant dense<0.000000e+00> : vector<8x128xf32>
    %2 = tpu.matmul %0, %1, %cst {dimension_numbers = #tpu.dot_dimension_numbers<[1], [0], [0], [1], [0, 0, 1, 1], [], []>} : vector<8x32xbf16>, vector<32x128xbf16>, vector<8x128xf32> -> vector<8x128xf32>
    %c0_3 = arith.constant 0 : index
    %c0_4 = arith.constant 0 : index
    %3 = vector.load %arg3[%c0_3, %c0_4] : memref<1x128xf32, #tpu.memory_space<vmem>>, vector<1x128xf32>
    %4 = vector.broadcast %3 : vector<1x128xf32> to vector<8x128xf32>
    %5 = arith.addf %2, %4 : vector<8x128xf32>
    %c0_5 = arith.constant 0 : index
    %c0_6 = arith.constant 0 : index
    %6 = vector.load %arg4[%c0_5, %c0_6] : memref<8x128xf32, #tpu.memory_space<vmem>>, vector<8x128xf32>
    tpu.vector_store %arg4[%c0_5, %c0_6], %5 {strides = array<i32>} : memref<8x128xf32, #tpu.memory_space<vmem>>, vector<8x128xf32>,
    %c0_7 = arith.constant 0 : index
    %c0_8 = arith.constant 0 : index
    %7 = vector.load %arg5[%c0_7, %c0_8] : memref<8x128xf32, #tpu.memory_space<vmem>>, vector<8x128xf32>
    tpu.vector_store %arg5[%c0_7, %c0_8], %5 {strides = array<i32>} : memref<8x128xf32, #tpu.memory_space<vmem>>, vector<8x128xf32>,
    return
  }
  func.func @transform_0(%arg0: i32) -> (i32, i32) {
    %c0_i32 = arith.constant 0 : i32
    %c0_i32_0 = arith.constant 0 : i32
    %c0_i32_1 = arith.constant 0 : i32
    return %c0_i32, %c0_i32_0 : i32, i32
  }
  func.func @transform_1(%arg0: i32) -> (i32, i32) {
    %c0_i32 = arith.constant 0 : i32
    %c0_i32_0 = arith.constant 0 : i32
    %c0_i32_1 = arith.constant 0 : i32
    return %c0_i32, %c0_i32_0 : i32, i32
  }
  func.func @transform_2(%arg0: i32) -> (i32, i32) {
    %c0_i32 = arith.constant 0 : i32
    %c0_i32_0 = arith.constant 0 : i32
    %c0_i32_1 = arith.constant 0 : i32
    return %c0_i32, %c0_i32_0 : i32, i32
  }
  func.func @transform_3(%arg0: i32) -> (i32, i32) {
    %c0_i32 = arith.constant 0 : i32
    %c0_i32_0 = arith.constant 0 : i32
    %c0_i32_1 = arith.constant 0 : i32
    return %c0_i32, %c0_i32_0 : i32, i32
  }
  func.func @transform_4(%arg0: i32) -> (i32, i32) {
    %c0_i32 = arith.constant 0 : i32
    %c0_i32_0 = arith.constant 0 : i32
    %c0_i32_1 = arith.constant 0 : i32
    return %c0_i32, %c0_i32_0 : i32, i32
  }
}

</mosaic_0001>

<bundles_post_ra>
// kernel: tpu_custom_call.1
= control target key start
LH: loop header
LB: loop body
LE: loop exit
PB: predicated region body
PF: predicated region fallthrough
CT: control target
= control target key end

     0   :  { %10 = vsyncpa [#allocation3], 0  ;;  %s291_s0 = inlined_call_operand.hbm [shape: bf16[8,32], index: 0, kind: input, shape index: {}]   ;;  %s292_s1 = inlined_call_operand.hbm [shape: bf16[32,128], index: 1, kind: input, shape index: {}]   ;;  %s293_s2 = inlined_call_operand.vmem [shape: f32[1,128], index: 2, kind: input, shape index: {}]   ;;  %s294_s3 = inlined_call_operand.hbm [shape: f32[8,128], index: 3, kind: output, shape index: {0}]   ;;  %s295_s4 = inlined_call_operand.hbm [shape: f32[8,128], index: 4, kind: output, shape index: {1}]  }
   0x1   :  { %11 = vsyncpa [#allocation6], 0 }
   0x2   :  { %12 = vsyncpa [#allocation4], 0 }
   0x3   :  { %13 = vsyncpa [#allocation9], 0  ;;  %s19_s17 = sshll.u32 %s291_s0, 4  ;;  %s245_s18 = smov [#allocation2]   ;;  %s20_s17 = int_to_ptr.hbm [resolvable:$true] %s19_s17 }
   0x4   :  { %s21_s19 = sshll.u32 %s245_s18, 4  ;;  %s29_s22 = sshll.u32 %s292_s1, 4  ;;  %s22_s19 = int_to_ptr.vmem [resolvable:$true] %s21_s19  ;;  %s30_s22 = int_to_ptr.hbm [resolvable:$true] %s29_s22 }
   0x5   :  { %24 = dma.hbm_to_vmem [thread:$0]  %s20_s17, 64, %s22_s19, [#allocation3]  }
   0x6   :  { %s246_s23 = smov [#allocation5]   ;;  %s247_s25 = smov 64  }
   0x7   :  { %s31_s24 = sshll.u32 %s246_s23, 4  ;;  %s248_s26 = smov 4   ;;  %s32_s24 = int_to_ptr.vmem [resolvable:$true] %s31_s24 }
   0x8   :  { %37 = dma.hbm_to_vmem [thread:$0]  %s30_s22, 256, %s32_s24, [#allocation6], %s247_s25, %s247_s25, %s248_s26  }
   0x9   :  { %237 = dma.done.wait [#allocation3], 64  }
   0xa   :  { %238 = vsyncadd [#allocation3], 4294967232 }
   0xb   :  { %239 = dma.done.wait [#allocation6], 256  }
   0xc   :  { %240 = vsyncadd [#allocation6], 4294967040  ;;  %v133_v0 = vld [vmem:[#allocation5 + $0x8] sm:$0xff]  ;;  %v132_v1 = vld [vmem:[#allocation5] sm:$0xff]  ;;  %vm70_vm0 = vcmask 261120   ;;  %s249_s27 = smov [#allocation7]  }
   0xd   :  { %80 = vmatpush.bf16.msra.mxu0 %v133_v0  ;;  %v49_v2 = vld [vmem:[#allocation2] sm:$0xf]  ;;  %s94_s28 = sshll.u32 %s249_s27, 4  ;;  %s96_s5 = sshll.u32 %s294_s3, 4  ;;  %s95_s28 = int_to_ptr.vmem [resolvable:$true] %s94_s28  ;;  %s97_s5 = int_to_ptr.hbm [resolvable:$true] %s96_s5 }
   0xe   :  { %v140_v3 = vld [vmem:[%s293_s2] ss:$0 sm:$0xff]  ;;  %s250_s6 = smov [#allocation8]   ;;  %s107_s10 = sshll.u32 %s295_s4, 4  ;;  %s108_s10 = int_to_ptr.hbm [resolvable:$true] %s107_s10 }
   0xf   :  { %s105_s7 = sshll.u32 %s250_s6, 4  ;;  %s106_s7 = int_to_ptr.vmem [resolvable:$true] %s105_s7 }
  0x11   :  { %81 = vmatpush.bf16.msra.mxu0 %v132_v1 }
  0x14   :  { %131 = vmatmul.msk.bf16.vlgmr.msra.gmra.mxu0 %vm70_vm0, %v49_v2 }
  0x91   :  { %v83_v4 = vpop.f32.mrf.mxu0 }
  0x92   :  { %v84_v5 = vadd.f32 %v140_v3, %v83_v4 }
  0x94   :  { %87 = vst [vmem:[#allocation7] sm:$0xff] %v84_v5 }
  0x95   :  { %88 = vst [vmem:[#allocation8] sm:$0xff] %v84_v5  ;;  %99 = dma.vmem_to_hbm [thread:$0]  %s95_s28, 128, %s97_s5, [#allocation4]  }
  0x96   :  { %110 = dma.vmem_to_hbm [thread:$0]  %s106_s7, 128, %s108_s10, [#allocation9]  }
  0x99   :  { %v85_v6 = vpop.f32.mrf.mxu0 }
  0x9a   :  { %241 = dma.done.wait [#allocation4], 128  }
  0x9b   :  { %242 = vsyncadd [#allocation4], 4294967168 }
  0x9c   :  { %243 = dma.done.wait [#allocation9], 128  }
  0x9d   :  { %244 = vsyncadd [#allocation9], 4294967168 }
  0x9e   :  { %119 = vsyncpa [#allocation3], 1 }
  0x9f   :  { %120 = vsyncpa [#allocation6], 1 }
  0xa0   :  { %121 = vsyncpa [#allocation4], 1 }
  0xa1   :  { %122 = vsyncpa [#allocation9], 1 }

</bundles_post_ra>
